<compile_context>
chip_gen: v6e
topology: v6e:2x2x1
jax: 0.10.0
libtpu: 0.0.40
codegen_flags: <defaults>
</compile_context>

<pallas_src>
import jax
import jax.numpy as jnp
from jax.experimental import pallas as pl
from jax.experimental.pallas import tpu as pltpu


def _round_up(x: int, m: int) -> int:
    return (x + m - 1) // m * m


def _cdiv(a: int, b: int) -> int:
    return (a + b - 1) // b


def _vmem_budget_bytes() -> int:
    """~75% of this chip's physical VMEM per core (48 MiB fallback)."""
    cap = None
    try:
        info = pltpu.get_tpu_info()
        cap = getattr(info, "vmem_capacity_bytes", None)
    except Exception:
        cap = None
    if not cap:
        cap = 64 * 1024 * 1024  # conservative: v7x-sized VMEM
    return int(cap) * 3 // 4


def _spec(block_shape, index_map, buffer_count=None):
    """BlockSpec with optional explicit buffer count (single-buffer constant
    operands); falls back gracefully if pipeline_mode is unsupported."""
    if buffer_count is not None:
        try:
            return pl.BlockSpec(block_shape, index_map,
                                pipeline_mode=pl.Buffered(buffer_count))
        except Exception:
            pass
    return pl.BlockSpec(block_shape, index_map)


def _gelu_exact(h):
    # Exact (erf-based) GELU, matching torch.nn.GELU() default, in f32.
    inv_sqrt2 = jnp.float32(0.7071067811865476)
    return jnp.float32(0.5) * h * (jnp.float32(1.0) + jax.lax.erf(h * inv_sqrt2))


# ----------------------------------------------------------------------------
# Kernels
# ----------------------------------------------------------------------------
def embedfc_fused_kernel(x_ref, w1_ref, b1_ref, w2_ref, b2_ref, o_ref):
    """One batch tile of y = gelu(x @ W1 + b1) @ W2 + b2 (W2 fully resident)."""
    x = x_ref[...].astype(w1_ref.dtype)          # in-kernel bf16 cast
    h = jnp.dot(x, w1_ref[...], preferred_element_type=jnp.float32)
    h = _gelu_exact(h + b1_ref[...])             # (1, d_emb_p) bias broadcast
    y = jnp.dot(h.astype(w2_ref.dtype), w2_ref[...],
                preferred_element_type=jnp.float32)
    o_ref[...] = (y + b2_ref[...]).astype(o_ref.dtype)


def embedfc_tiled_kernel(x_ref, w1_ref, b1_ref, w2_ref, b2_ref, o_ref, h_ref):
    """(batch tile, W2 column tile) grid step.  Hidden activation is computed
    once per batch tile (at j == 0) and cached in VMEM scratch for the
    remaining column tiles (requires j innermost and 'arbitrary')."""
    @pl.when(pl.program_id(1) == 0)
    def _():
        x = x_ref[...].astype(w1_ref.dtype)
        h = jnp.dot(x, w1_ref[...], preferred_element_type=jnp.float32)
        h_ref[...] = _gelu_exact(h + b1_ref[...]).astype(h_ref.dtype)

    y = jnp.dot(h_ref[...], w2_ref[...], preferred_element_type=jnp.float32)
    o_ref[...] = (y + b2_ref[...]).astype(o_ref.dtype)


# ----------------------------------------------------------------------------
# Parameter preparation (hoisted out of the per-call path)
# ----------------------------------------------------------------------------
def prepare_embedfc_params(w1, b1, w2, b2, compute_dtype=jnp.bfloat16):
    """Pad weight output dims to lane-dense multiples of 128 and cast to the
    MXU compute dtype ONCE.  w1: (d_in, d_emb); w2: (d_emb, d_emb)."""
    d_in, d_emb = w1.shape
    assert w2.shape == (d_emb, d_emb)
    assert b1.shape == (d_emb,) and b2.shape == (d_emb,)
    d_emb_p = _round_up(d_emb, 128)
    pe = d_emb_p - d_emb
    w1p = jnp.pad(w1, ((0, 0), (0, pe))).astype(compute_dtype)            # (d_in, d_emb_p)
    w2p = jnp.pad(w2, ((0, pe), (0, pe))).astype(compute_dtype)           # (d_emb_p, d_emb_p)
    b1p = jnp.pad(jnp.asarray(b1, jnp.float32), (0, pe)).reshape(1, -1)   # (1, d_emb_p) f32
    b2p = jnp.pad(jnp.asarray(b2, jnp.float32), (0, pe)).reshape(1, -1)
    return dict(w1=w1p, b1=b1p, w2=w2p, b2=b2p, d_in=d_in, d_emb=d_emb,
                d_emb_p=d_emb_p, compute_dtype=compute_dtype)


# ----------------------------------------------------------------------------
# Wrapper
# ----------------------------------------------------------------------------
def embed_fc(x, params, *, batch_tile=None, n_tile=None):
    """y = GELU(x @ W1 + b1) @ W2 + b2.  x: (..., input_dim); params from
    prepare_embedfc_params.  Returns (..., emb_dim) in x.dtype."""
    d_in = params["d_in"]
    d_emb = params["d_emb"]
    d_emb_p = params["d_emb_p"]
    cdt = params["compute_dtype"]
    w1p, b1p, w2p, b2p = params["w1"], params["b1"], params["w2"], params["b2"]

    orig_shape = x.shape
    assert orig_shape[-1] == d_in
    if x.ndim != 2:
        x = x.reshape(-1, d_in)
    B = x.shape[0]
    out_dtype = x.dtype

    xb = jnp.dtype(x.dtype).itemsize
    cb = jnp.dtype(cdt).itemsize
    ob = jnp.dtype(out_dtype).itemsize
    budget = _vmem_budget_bytes()

    def pick_tb(pref):
        t = max(8, min(_round_up(pref, 8), _round_up(B, 8)))
        # Keep >= 2 batch tiles when possible so the "parallel" axis can be
        # split across TensorCores (v7x has 2 TCs per chip).
        if _round_up(B, 8) >= 16 and _cdiv(B, t) < 2:
            t = _round_up(_cdiv(B, 2), 8)
        return t

    def fused_vmem(tb_):
        return (2 * tb_ * d_in * xb            # x tiles (double-buffered)
                + d_in * d_emb_p * cb          # W1 (constant index, 1 buffer)
                + d_emb_p * 4                  # b1
                + d_emb_p * d_emb_p * cb       # W2 (constant index, 1 buffer)
                + d_emb_p * 4                  # b2
                + 2 * tb_ * d_emb_p * ob       # out tiles (double-buffered)
                + 3 * tb_ * d_emb_p * 4)       # live f32 intermediates

    def tiled_vmem(tb_, tn_):
        return (2 * tb_ * d_in * xb
                + d_in * d_emb_p * cb
                + d_emb_p * 4
                + 2 * d_emb_p * tn_ * cb       # W2 column slab (double-buffered)
                + 2 * tn_ * 4
                + 2 * tb_ * tn_ * ob
                + tb_ * d_emb_p * cb           # hidden-activation scratch
                + 2 * tb_ * d_emb_p * 4)       # f32 intermediates at j == 0

    tb = pick_tb(batch_tile if batch_tile is not None else 256)
    use_fused = (n_tile is None or n_tile >= d_emb_p) and fused_vmem(tb) <= budget

    if use_fused:
        nb = _cdiv(B, tb)
        B_p = nb * tb
        xp = x if B_p == B else jnp.pad(x, ((0, B_p - B), (0, 0)))
        vmem_limit = int(min(budget,
                             max(16 << 20, fused_vmem(tb) * 3 // 2 + (1 << 20))))
        cost = pl.CostEstimate(
            flops=2 * B_p * d_in * d_emb_p + 2 * B_p * d_emb_p * d_emb_p,
            transcendentals=B_p * d_emb_p,
            bytes_accessed=int(B_p * d_in * xb + w1p.size * cb + w2p.size * cb
                               + b1p.size * 4 + b2p.size * 4
                               + B_p * d_emb_p * ob))
        out = pl.pallas_call(
            embedfc_fused_kernel,
            out_shape=jax.ShapeDtypeStruct((B_p, d_emb_p), out_dtype),
            grid_spec=pltpu.PrefetchScalarGridSpec(
                num_scalar_prefetch=0,
                grid=(nb,),
                in_specs=[
                    _spec((tb, d_in), lambda i: (i, 0)),              # x tile (cast in-kernel)
                    _spec((d_in, d_emb_p), lambda i: (0, 0), 1),      # W1 (single buffer)
                    _spec((1, d_emb_p), lambda i: (0, 0), 1),         # b1
                    _spec((d_emb_p, d_emb_p), lambda i: (0, 0), 1),   # W2 fully resident
                    _spec((1, d_emb_p), lambda i: (0, 0), 1),         # b2
                ],
                out_specs=pl.BlockSpec((tb, d_emb_p), lambda i: (i, 0)),
            ),
            compiler_params=pltpu.CompilerParams(
                dimension_semantics=("parallel",),
                vmem_limit_bytes=vmem_limit),
            cost_estimate=cost,
        )(xp, w1p, b1p, w2p, b2p)
    else:
        # ---- tiled fallback: W2 too large for full VMEM residency ----------
        if batch_tile is None:
            tb = pick_tb(512)        # bigger batch tile amortizes W2 restream
        while tb > 8 and tiled_vmem(tb, 128) > budget:
            tb = max(8, _round_up(tb // 2, 8))
        nb = _cdiv(B, tb)
        B_p = nb * tb
        xp = x if B_p == B else jnp.pad(x, ((0, B_p - B), (0, 0)))

        # W2 column tile: largest 128-multiple divisor of d_emb_p that fits,
        # preferring full-MXU 256 granules (v6e/v7x) when close in size.
        cands = [t for t in range(d_emb_p, 127, -128) if d_emb_p % t == 0]
        if n_tile is not None:
            lim = max(128, _round_up(min(n_tile, d_emb_p), 128))
            cands = [t for t in cands if t <= lim] or [128]
        fitting = [t for t in cands if tiled_vmem(tb, t) <= budget] or [cands[-1]]
        tn = fitting[0]
        pref256 = [t for t in fitting if t % 256 == 0 and 2 * t >= tn]
        if pref256:
            tn = pref256[0]
        nj = d_emb_p // tn

        vmem_limit = int(min(budget,
                             max(16 << 20, tiled_vmem(tb, tn) * 3 // 2 + (1 << 20))))
        cost = pl.CostEstimate(
            flops=2 * B_p * d_in * d_emb_p + 2 * B_p * d_emb_p * d_emb_p,
            transcendentals=B_p * d_emb_p,
            bytes_accessed=int(B_p * d_in * xb + w1p.size * cb
                               + w2p.size * cb * nb          # W2 restream per batch tile
                               + b1p.size * 4 + b2p.size * 4 * nb
                               + B_p * d_emb_p * ob))
        out = pl.pallas_call(
            embedfc_tiled_kernel,
            out_shape=jax.ShapeDtypeStruct((B_p, d_emb_p), out_dtype),
            grid_spec=pltpu.PrefetchScalarGridSpec(
                num_scalar_prefetch=0,
                grid=(nb, nj),
                in_specs=[
                    _spec((tb, d_in), lambda i, j: (i, 0)),           # x tile
                    _spec((d_in, d_emb_p), lambda i, j: (0, 0), 1),   # W1 (single buffer)
                    _spec((1, d_emb_p), lambda i, j: (0, 0), 1),      # b1
                    _spec((d_emb_p, tn), lambda i, j: (0, j)),        # W2 column slab
                    _spec((1, tn), lambda i, j: (0, j)),              # b2 slab
                ],
                out_specs=pl.BlockSpec((tb, tn), lambda i, j: (i, j)),
                scratch_shapes=[pltpu.VMEM((tb, d_emb_p), cdt)],
            ),
            compiler_params=pltpu.CompilerParams(
                # j must stay innermost + "arbitrary": hidden-activation
                # scratch is reused across j steps of one batch tile.
                dimension_semantics=("parallel", "arbitrary"),
                vmem_limit_bytes=vmem_limit),
            cost_estimate=cost,
        )(xp, w1p, b1p, w2p, b2p)

    out = out[:B, :d_emb]
    if len(orig_shape) != 2:
        out = out.reshape(orig_shape[:-1] + (d_emb,))
    return out


def init_embedfc_params(key, input_dim, emb_dim, dtype=jnp.float32):
    """PyTorch nn.Linear default init: uniform(-1/sqrt(fan_in), 1/sqrt(fan_in)).
    Weights stored as (in, out), i.e. transpose of PyTorch's (out, in)."""
    k1, k2, k3, k4 = jax.random.split(key, 4)
    bound1 = 1.0 / (input_dim ** 0.5)
    bound2 = 1.0 / (emb_dim ** 0.5)
    w1 = jax.random.uniform(k1, (input_dim, emb_dim), dtype, -bound1, bound1)
    b1 = jax.random.uniform(k2, (emb_dim,), dtype, -bound1, bound1)
    w2 = jax.random.uniform(k3, (emb_dim, emb_dim), dtype, -bound2, bound2)
    b2 = jax.random.uniform(k4, (emb_dim,), dtype, -bound2, bound2)
    return w1, b1, w2, b2


if __name__ == "__main__":
    key = jax.random.PRNGKey(0)

    def bf16_ref(x, w1, b1, w2, b2):
        f = lambda a: a.astype(jnp.bfloat16).astype(jnp.float32)
        h = jnp.dot(f(x), f(w1)) + b1.reshape(1, -1)
        h = jax.nn.gelu(h, approximate=False)
        return jnp.dot(f(h), f(w2)) + b2.reshape(1, -1)

    def f32_ref(x, w1, b1, w2, b2):
        h = jax.nn.gelu(jnp.dot(x, w1) + b1.reshape(1, -1), approximate=False)
        return jnp.dot(h, w2) + b2.reshape(1, -1)

    # ---- test 1: typical EmbedFC sizes -> fused (W2-resident) path ----------
    input_dim, emb_dim, batch = 16, 32, 64
    kx, kp, key = jax.random.split(key, 3)
    x = jax.random.normal(kx, (batch, input_dim), jnp.float32)
    w1, b1, w2, b2 = init_embedfc_params(kp, input_dim, emb_dim)
    params = prepare_embedfc_params(w1, b1, w2, b2)   # pad + bf16 cast ONCE
    out = jax.block_until_ready(embed_fc(x, params))
    assert out.shape == (batch, emb_dim)
    assert jnp.max(jnp.abs(out - bf16_ref(x, w1, b1, w2, b2))) < 2e-3
    assert jnp.max(jnp.abs(out - f32_ref(x, w1, b1, w2, b2))) < 5e-2

    # ---- test 2: force the tiled (W2 column-tiled) path ----------------------
    input_dim2, emb_dim2, batch2 = 16, 256, 64
    kx2, kp2, key = jax.random.split(key, 3)
    x2 = jax.random.normal(kx2, (batch2, input_dim2), jnp.float32)
    w1b, b1b, w2b, b2b = init_embedfc_params(kp2, input_dim2, emb_dim2)
    params2 = prepare_embedfc_params(w1b, b1b, w2b, b2b)
    out2 = jax.block_until_ready(embed_fc(x2, params2, n_tile=128))
    assert out2.shape == (batch2, emb_dim2)
    assert jnp.max(jnp.abs(out2 - bf16_ref(x2, w1b, b1b, w2b, b2b))) < 1e-2
    assert jnp.max(jnp.abs(out2 - f32_ref(x2, w1b, b1b, w2b, b2b))) < 5e-2

    print("KERNEL_OK")
</pallas_src>

<mosaic_0001>
module attributes {stable_mosaic.version = 11 : i64} {
  func.func @embedfc_fused_kernel(%arg0: i32, %arg1: memref<32x16xf32, #tpu.memory_space<vmem>>, %arg2: memref<16x128xbf16, #tpu.memory_space<vmem>>, %arg3: memref<1x128xf32, #tpu.memory_space<vmem>>, %arg4: memref<128x128xbf16, #tpu.memory_space<vmem>>, %arg5: memref<1x128xf32, #tpu.memory_space<vmem>>, %arg6: memref<32x128xf32, #tpu.memory_space<vmem>>) attributes {dimension_semantics = [#tpu.dimension_semantics<parallel>], iteration_bounds = array<i64: 2>, scalar_prefetch = 0 : i64, scratch_operands = 0 : i64, tpu.core_type = #tpu.core_type<tc>, window_params = [{transform_indices = @transform_0, window_bounds = array<i64: 32, 16>}, {pipeline_mode = #tpu.pipeline_mode<synchronous>, transform_indices = @transform_1, window_bounds = array<i64: 16, 128>}, {pipeline_mode = #tpu.pipeline_mode<synchronous>, transform_indices = @transform_2, window_bounds = array<i64: 1, 128>}, {pipeline_mode = #tpu.pipeline_mode<synchronous>, transform_indices = @transform_3, window_bounds = array<i64: 128, 128>}, {pipeline_mode = #tpu.pipeline_mode<synchronous>, transform_indices = @transform_4, window_bounds = array<i64: 1, 128>}, {transform_indices = @transform_5, window_bounds = array<i64: 32, 128>}]} {
    %c0 = arith.constant 0 : index
    %c0_0 = arith.constant 0 : index
    %0 = vector.load %arg1[%c0, %c0_0] : memref<32x16xf32, #tpu.memory_space<vmem>>, vector<32x16xf32>
    %1 = arith.truncf %0 : vector<32x16xf32> to vector<32x16xbf16>
    %c0_1 = arith.constant 0 : index
    %c0_2 = arith.constant 0 : index
    %2 = vector.load %arg2[%c0_1, %c0_2] : memref<16x128xbf16, #tpu.memory_space<vmem>>, vector<16x128xbf16>
    %cst = arith.constant dense<0.000000e+00> : vector<32x128xf32>
    %3 = tpu.matmul %1, %2, %cst {dimension_numbers = #tpu.dot_dimension_numbers<[1], [0], [0], [1], [0, 0, 1, 1], [], []>} : vector<32x16xbf16>, vector<16x128xbf16>, vector<32x128xf32> -> vector<32x128xf32>
    %c0_3 = arith.constant 0 : index
    %c0_4 = arith.constant 0 : index
    %4 = vector.load %arg3[%c0_3, %c0_4] : memref<1x128xf32, #tpu.memory_space<vmem>>, vector<1x128xf32>
    %5 = vector.broadcast %4 : vector<1x128xf32> to vector<32x128xf32>
    %6 = arith.addf %3, %5 : vector<32x128xf32>
    %cst_5 = arith.constant 5.000000e-01 : f32
    %7 = vector.broadcast %cst_5 : f32 to vector<32x128xf32>
    %8 = arith.mulf %7, %6 : vector<32x128xf32>
    %cst_6 = arith.constant 0.707106769 : f32
    %9 = vector.broadcast %cst_6 : f32 to vector<32x128xf32>
    %10 = arith.mulf %6, %9 : vector<32x128xf32>
    %11 = math.erf %10 : vector<32x128xf32>
    %cst_7 = arith.constant 1.000000e+00 : f32
    %12 = vector.broadcast %cst_7 : f32 to vector<32x128xf32>
    %13 = arith.addf %12, %11 : vector<32x128xf32>
    %14 = arith.mulf %8, %13 : vector<32x128xf32>
    %15 = arith.truncf %14 : vector<32x128xf32> to vector<32x128xbf16>
    %c0_8 = arith.constant 0 : index
    %c0_9 = arith.constant 0 : index
    %16 = vector.load %arg4[%c0_8, %c0_9] : memref<128x128xbf16, #tpu.memory_space<vmem>>, vector<128x128xbf16>
    %cst_10 = arith.constant dense<0.000000e+00> : vector<32x128xf32>
    %17 = tpu.matmul %15, %16, %cst_10 {dimension_numbers = #tpu.dot_dimension_numbers<[1], [0], [0], [1], [0, 0, 1, 1], [], []>} : vector<32x128xbf16>, vector<128x128xbf16>, vector<32x128xf32> -> vector<32x128xf32>
    %c0_11 = arith.constant 0 : index
    %c0_12 = arith.constant 0 : index
    %18 = vector.load %arg5[%c0_11, %c0_12] : memref<1x128xf32, #tpu.memory_space<vmem>>, vector<1x128xf32>
    %19 = vector.broadcast %18 : vector<1x128xf32> to vector<32x128xf32>
    %20 = arith.addf %17, %19 : vector<32x128xf32>
    %c0_13 = arith.constant 0 : index
    %c0_14 = arith.constant 0 : index
    %21 = vector.load %arg6[%c0_13, %c0_14] : memref<32x128xf32, #tpu.memory_space<vmem>>, vector<32x128xf32>
    tpu.vector_store %arg6[%c0_13, %c0_14], %20 {strides = array<i32>} : memref<32x128xf32, #tpu.memory_space<vmem>>, vector<32x128xf32>,
    return
  }
  func.func @transform_0(%arg0: i32) -> (i32, i32) {
    %c0_i32 = arith.constant 0 : i32
    %c0_i32_0 = arith.constant 0 : i32
    return %arg0, %c0_i32 : i32, i32
  }
  func.func @transform_1(%arg0: i32) -> (i32, i32) {
    %c0_i32 = arith.constant 0 : i32
    %c0_i32_0 = arith.constant 0 : i32
    %c0_i32_1 = arith.constant 0 : i32
    return %c0_i32, %c0_i32_0 : i32, i32
  }
  func.func @transform_2(%arg0: i32) -> (i32, i32) {
    %c0_i32 = arith.constant 0 : i32
    %c0_i32_0 = arith.constant 0 : i32
    %c0_i32_1 = arith.constant 0 : i32
    return %c0_i32, %c0_i32_0 : i32, i32
  }
  func.func @transform_3(%arg0: i32) -> (i32, i32) {
    %c0_i32 = arith.constant 0 : i32
    %c0_i32_0 = arith.constant 0 : i32
    %c0_i32_1 = arith.constant 0 : i32
    return %c0_i32, %c0_i32_0 : i32, i32
  }
  func.func @transform_4(%arg0: i32) -> (i32, i32) {
    %c0_i32 = arith.constant 0 : i32
    %c0_i32_0 = arith.constant 0 : i32
    %c0_i32_1 = arith.constant 0 : i32
    return %c0_i32, %c0_i32_0 : i32, i32
  }
  func.func @transform_5(%arg0: i32) -> (i32, i32) {
    %c0_i32 = arith.constant 0 : i32
    %c0_i32_0 = arith.constant 0 : i32
    return %arg0, %c0_i32 : i32, i32
  }
}

</mosaic_0001>

<bundles_post_ra>
// kernel: tpu_custom_call.1
= control target key start
LH: loop header
LB: loop body
LE: loop exit
PB: predicated region body
PF: predicated region fallthrough
CT: control target
= control target key end

     0   :  { %10 = vsyncpa [#allocation3], 0  ;;  %s878_s0 = inlined_call_operand.vmem [shape: f32[64,16], index: 0, kind: input, shape index: {}]   ;;  %s879_s1 = inlined_call_operand.vmem [shape: bf16[16,128], index: 1, kind: input, shape index: {}]   ;;  %s880_s2 = inlined_call_operand.vmem [shape: f32[1,128], index: 2, kind: input, shape index: {}]   ;;  %s881_s3 = inlined_call_operand.vmem [shape: bf16[128,128], index: 3, kind: input, shape index: {}]   ;;  %s882_s4 = inlined_call_operand.vmem [shape: f32[1,128], index: 4, kind: input, shape index: {}]   ;;  %s883_s5 = inlined_call_operand.hbm [shape: f32[64,128], index: 5, kind: output, shape index: {}]  }
   0x1   :  { %12 = vsyncpa [#allocation3 + $0x1], 0  ;;  %s744_s18 = smov 0   ;;  %s746_s19 = smov 0  }
   0x2   :  { %s748_s20 = smov 0   ;;  %s750_s21 = smov 0  }
   0x3 LB: > { %s765_s22 = sadd.s32 4294967295, %s709_s21   ;;  %s526_s23 = sadd.s32 4294967294, %s709_s21   ;;  %s709_s21 = sphi %s750_s21, %s889_s21   ;;  %s705_s20 = sphi %s748_s20, %s888_s20   ;;  %s701_s19 = sphi %s746_s19, %s887_s19   ;;  %s697_s18 = sphi %s744_s18, %s886_s18  }
   0x4   : > { %s769_s24 = sadd.s32 1, %s709_s21   ;;  %s135_s25 = sadd.s32 1, %s705_s20 }
   0x5   : > { %s132_s26 = ssub.s32 %s709_s21, %s769_s24  ;;  %p145_p0 = scmp.ne.s32.totalorder %s705_s20, %s701_s19 }
   0x6   : > { %p133_p1 = scmp.eq.s32.totalorder %s132_s26, 0  ;;  %p146_p2 = scmp.eq.s32.totalorder %s765_s22, 1 }
   0x7   : > { %p151_p3 = scmp.ne.s32.totalorder %s701_s19, %s697_s18  ;;  %p152_p4 = scmp.eq.s32.totalorder %s526_s23, 1 }
   0x8   : > { %s780_s27 = scalar_select %p133_p1, %s705_s20, %s135_s25  }
   0x9   : > { %p782_p5 = por %p146_p2, %p145_p0  ;;  %p786_p6 = por %p152_p4, %p151_p3 }
   0xa   : > { %p529_p7 = scmp.ge.s32.totalorder %s709_s21, 1  ;;  %p191_p8 = scmp.lt.s32.totalorder %s709_s21, 3 }
   0xc   : > { %p192_p9 = pnand %p529_p7, %p191_p8 }
   0xd   : > { %s531_s7 = sshll.u32 (!%p192_p9), %s765_s22, 2  ;;  %s216_s14 = sand.u32 (!%p192_p9), 1, %s701_s19  }
   0xe   : > { %195 = sbr.rel (%p192_p9) target bundleno = 465 (0x1d1), region = 40  ;;  %p220_p10 = scmp.lt.s32.totalorder (!%p192_p9), %s531_s7, 7 }
   0xf   : > { %s530_s15 = sshll.u32 (!%p192_p9), %s216_s14, 5  ;;  %s551_s26 = sshll.u32 (!%p192_p9), %s765_s22, 9 }
  0x10   : > { %s218_s23 = scalar_lea.vmem (!%p192_p9), [#allocation2], %s530_s15  ;;  %s711_s9 = smov (!%p192_p9), [#allocation2]  }
  0x11   : > { %s464_s25 = sshll.u32 (!%p192_p9), %s218_s23, 4  ;;  %s653_s10 = sshll.u32 (!%p192_p9), %s711_s9, 4  ;;  %s831_s25 = int_to_ptr.vmem [resolvable:$true] %s464_s25  ;;  %s654_s10 = int_to_ptr.vmem [resolvable:$false] %s653_s10 }
  0x12   : > { %s649_s22 = scalar_lea.vmem (!%p192_p9), %s831_s25, 512  ;;  %p656_p0 = scmp.lt.s32.totalorder (!%p192_p9), %s831_s25, %s654_s10 }
  0x13   : > { %v632_v0 = vld [vmem:[%s879_s1] sm:$0xff]   ;;  %s891_s7 = smov (!%p220_p10, %s531_s7), 7  ;;  %vm248_vm0 = vcmask 130048   ;;  %v633_v7 = vld [vmem:[%s881_s3 + $0x38] sm:$0xff]   ;;  %v634_v8 = vld [vmem:[%s881_s3 + $0x30] sm:$0xff]   ;;  %p650_p11 = scmp.ne.s32.totalorder %s831_s25, %s649_s22 }
  0x14   : > { %565 = vmatprep.subr.bf16.mxu0 %v632_v0  ;;  %s532_s8 = sshll.u32 %s891_s7, 3  ;;  %571 = vmatprep.subr.bf16.mxu1 %v633_v7  ;;  %v635_v9 = vld [vmem:[%s881_s3 + $0x28] sm:$0xff]   ;;  %v636_v10 = vld [vmem:[%s881_s3 + $0x20] sm:$0xff]   ;;  %v637_v11 = vld [vmem:[%s881_s3 + $0x18] sm:$0xff]   ;;  %s836_s7 = scalar_lea.hbm %s883_s5, %s551_s26 }
  0x15   : > { %566 = vmatpush3.bf16.msra.mxu0 %v632_v0  ;;  %s223_s11 = scalar_lea.vmem %s878_s0, %s532_s8  ;;  %572 = vmatpush3.bf16.msra.mxu1 %v633_v7  ;;  %v638_v12 = vld [vmem:[%s881_s3 + $0x10] sm:$0xff]   ;;  %v639_v13 = vld [vmem:[%s881_s3 + $0x8] sm:$0xff]   ;;  %v640_v14 = vld [vmem:[%s881_s3] sm:$0xff]   ;;  %s838_s8 = scalar_lea.sflag [#allocation3], %s216_s14 }
  0x16   : > { %v227_v1 = vld [vmem:[%s223_s11] sm:$0xff]  ;;  %v228_v2 = vld [vmem:[%s223_s11 + $0x8] sm:$0xff]  ;;  %v229_v3 = vld [vmem:[%s223_s11 + $0x10] sm:$0xff]  ;;  %573 = vmatprep.subr.bf16.mxu1 %v634_v8  ;;  %p651_p12 = pnand %p650_p11, %p782_p5 }
  0x17   : > { %v231_v4 = vpack.c.bf16 %v228_v2, %v227_v1  ;;  %v230_v5 = vld [vmem:[%s223_s11 + $0x18] sm:$0xff]  ;;  %v533_v15 = vld [vmem:[%s880_s2] ss:$0 sm:$0xff]  ;;  %s655_s11 = scalar_lea.vmem %s654_s10, 1024 }
  0x18   : > { %v232_v6 = vpack.c.bf16 %v230_v5, %v229_v3  ;;  %v537_v46 = vld [vmem:[%s882_s4] ss:$0 sm:$0xff]  ;;  %p652_p13 = pneg %p651_p12  ;;  %p657_p1 = scmp.lt.s32.totalorder %s655_s11, %s649_s22 }
  0x19   : > { %567 = vmatprep.mubr.msk.bf16.mxu0 %vm248_vm0, %v231_v4  ;;  %574 = vmatpush3.bf16.msra.mxu1 %v634_v8 }
  0x1a   : > { %568 = vmatmul.mubr.msk.bf16.vlgmr.msra.gmra.mxu0 %vm248_vm0, %v232_v6  ;;  %575 = vmatprep.subr.bf16.mxu1 %v635_v9  ;;  %p658_p2 = por %p657_p1, %p656_p0 }
  0x1c   : > { %p659_p3 = pnand %p658_p2, %p652_p13 }
  0x1d   : > { %576 = vmatpush3.bf16.msra.mxu1 %v635_v9 }
  0x1e   : > { %577 = vmatprep.subr.bf16.mxu1 %v636_v10 }
  0x21   : > { %578 = vmatpush3.bf16.msra.mxu1 %v636_v10 }
  0x22   : > { %579 = vmatprep.subr.bf16.mxu1 %v637_v11 }
  0x25   : > { %580 = vmatpush3.bf16.msra.mxu1 %v637_v11 }
  0x26   : > { %581 = vmatprep.subr.bf16.mxu1 %v638_v12 }
  0x29   : > { %582 = vmatpush3.bf16.msra.mxu1 %v638_v12 }
  0x2a   : > { %583 = vmatprep.subr.bf16.mxu1 %v639_v13 }
  0x2d   : > { %584 = vmatpush3.bf16.msra.mxu1 %v639_v13 }
  0x2e   : > { %585 = vmatprep.subr.bf16.mxu1 %v640_v14 }
  0x31   : > { %586 = vmatpush3.bf16.msra.mxu1 %v640_v14 }
  0xda   : > { %v569_v16 = vpop.f32.mrf.mxu0 }
  0xdb   : > { %v298_v17 = vadd.f32 %v569_v16, %v533_v15 }
  0xdc   : > { %v289_v18 = vpop.f32.mrf.mxu0 }
  0xdd   : > { %v290_v19 = vadd.f32 %v533_v15, %v289_v18  ;;  %v310_v20 = vmul.f32 0.70710677, %v298_v17  ;;  %v306_v39 = vmul.f32 0.5, %v298_v17 }
  0xde   : > { %v570_v21 = vpop.f32.mrf.mxu0 }
  0xdf   : > { %v308_v22 = vmul.f32 0.70710677, %v290_v19  ;;  %v301_v23 = vadd.f32 %v570_v21, %v533_v15  ;;  %v304_v36 = vmul.f32 0.5, %v290_v19 }
  0xe0   : > { %v292_v24 = vpop.f32.mrf.mxu0 }
  0xe1   : > { %641 = verf.f32 %v308_v22  ;;  %v311_v25 = vmul.f32 0.70710677, %v301_v23  ;;  %v293_v26 = vadd.f32 %v533_v15, %v292_v24  ;;  %v307_v35 = vmul.f32 0.5, %v301_v23 }
  0xe2   : > { %643 = verf.f32 %v310_v20 }
  0xe3   : > { %645 = verf.f32 %v311_v25  ;;  %v309_v27 = vmul.f32 0.70710677, %v293_v26  ;;  %v305_v37 = vmul.f32 0.5, %v293_v26 }
  0xe5   : > { %647 = verf.f32 %v309_v27 }
  0xee   : > { %v642_v28 = vpop.eup %641 }
  0xef   : > { %v644_v29 = vpop.eup %643  ;;  %v316_v32 = vadd.f32 1.0, %v642_v28 }
  0xf0   : > { %v646_v30 = vpop.eup %645  ;;  %v318_v34 = vadd.f32 1.0, %v644_v29 }
  0xf1   : > { %v319_v31 = vadd.f32 1.0, %v646_v30  ;;  %v320_v41 = vmul.f32 %v316_v32, %v304_v36 }
  0xf2   : > { %v648_v33 = vpop.eup %647  ;;  %v322_v43 = vmul.f32 %v318_v34, %v306_v39 }
  0xf3   : > { %v317_v38 = vadd.f32 1.0, %v648_v33  ;;  %v323_v40 = vmul.f32 %v319_v31, %v307_v35 }
  0xf5   : > { %v321_v42 = vmul.f32 %v317_v38, %v305_v37  ;;  %v325_v45 = vpack.c.bf16 %v323_v40, %v322_v43 }
  0xf7   : > { %v324_v44 = vpack.c.bf16 %v321_v42, %v320_v41 }
  0xf9   : > { %587 = vmatprep.mubr.bf16.mxu1 %v324_v44 }
  0xfa   : > { %588 = vmatmul.mubr.bf16.vlgmr.msra.gmra.mxu1 %v325_v45 }
 0x1ba   : > { %v589_v47 = vpop.f32.mrf.mxu1 }
 0x1bb   : > { %v440_v48 = vadd.f32 %v589_v47, %v537_v46 }
 0x1bc   : > { %v431_v49 = vpop.f32.mrf.mxu1 }
 0x1bd   : > { %448 = vst [vmem:[%s218_s23 + $0x10] sm:$0xff] %v440_v48  ;;  %v432_v50 = vadd.f32 %v537_v46, %v431_v49 }
 0x1be   : > { %v590_v51 = vpop.f32.mrf.mxu1 }
 0x1bf   : > { %446 = vst [vmem:[%s218_s23] sm:$0xff] %v432_v50  ;;  %v443_v52 = vadd.f32 %v590_v51, %v537_v46 }
 0x1c0   : > { %v434_v53 = vpop.f32.mrf.mxu1 }
 0x1c1   : > { %449 = vst [vmem:[%s218_s23 + $0x18] sm:$0xff] %v443_v52  ;;  %v435_v54 = vadd.f32 %v537_v46, %v434_v53 }
 0x1c3   : > { %447 = vst [vmem:[%s218_s23 + $0x8] sm:$0xff] %v435_v54 }
 0x1c4   : > { %662 = shalt.err (!%p659_p3)
}
 0x1c5   : > { %s663_s12 = scalar_lea.hbm %s836_s7, 512  ;;  %s667_s15 = scalar_lea.hbm %s883_s5, 1024 }
 0x1c6   : > { %p664_p4 = scmp.ne.s32.totalorder %s836_s7, %s663_s12  ;;  %p668_p9 = scmp.lt.s32.totalorder %s836_s7, %s883_s5 }
 0x1c7   : > { %p669_p10 = scmp.lt.s32.totalorder %s667_s15, %s663_s12 }
 0x1c8   : > { %p665_p7 = pnand %p664_p4, %p782_p5 }
 0x1c9   : > { %p670_p11 = por %p669_p10, %p668_p9 }
 0x1ca   : > { %p666_p8 = pneg %p665_p7 }
 0x1cc   : > { %p671_p12 = pnand %p670_p11, %p666_p8 }
 0x1ce   : > { %674 = shalt.err (!%p671_p12)
}
 0x1cf   : > { %s712_s23 = smov 128   ;;  %s713_s26 = smov 8  }
 0x1d0   : > { %591 = dma.vmem_to_hbm [thread:$0]  (%p782_p5), %s831_s25, 512, %s836_s7, %s838_s8, %s712_s23, %s712_s23, %s713_s26  }
 0x1d1 PF: > { %p597_p13 = scmp.ge.s32.totalorder %s709_s21, 2  ;;  %s479_s30 = sand.u32 1, %s697_s18  }
 0x1d2   : > { %s480_s6 = scalar_lea.sflag [#allocation3], %s479_s30 }
 0x1d3   : > { %p594_p0 = pnand %p597_p13, %p786_p6 }
 0x1d5   : > { %p595_p1 = pneg %p594_p0 }
 0x1d7   : > { %692 = dma.done.wait (%p595_p1), %s480_s6, 512  }
 0x1d8   : > { %694 = vsyncadd (%p595_p1), %s480_s6, 4294966784  ;;  %p15_p2 = scmp.ge.s32.totalorder %s769_s24, 4   ;;  %s886_s18 = smov %s701_s19 }
 0x1d9   : > { %s887_s19 = smov %s705_s20  ;;  %s888_s20 = smov %s780_s27 }
 0x1da   : > { %s889_s21 = smov %s769_s24  ;;  %17 = sbr.rel (!%p15_p2) target bundleno = 3 (0x3), region = 75 }
 0x1df   :  { %485 = vsyncpa [#allocation3], 1 }
 0x1e0   :  { %487 = vsyncpa [#allocation3 + $0x1], 1 }

</bundles_post_ra>
